<compile_context>
chip_gen: v5e
topology: v5e:2x2
jax: 0.10.0
libtpu: 0.0.40
codegen_flags: <defaults>
</compile_context>

<pallas_src>
import math
from functools import partial

import jax
import jax.numpy as jnp
from jax.experimental import pallas as pl
from jax.experimental.pallas import tpu as pltpu


def _full_spec(shape):
    zeros = (0,) * len(shape)
    return pl.BlockSpec(tuple(shape), lambda i, _z=zeros: _z)


# ----------------------------- encoder kernel ------------------------------

def _encoder_kernel(patch_ref, cw_ref, cb_ref, aw_ref, ab_ref, v_ref):
    # patch_ref: (1, rows, C*4) bf16, cw: (C*4, F) bf16, aw: (1, F, H) bf16
    a = jnp.dot(patch_ref[0], cw_ref[...], preferred_element_type=jnp.float32)
    a = jnp.maximum(a + cb_ref[...], 0.0)                      # conv + ReLU (stays in VMEM)
    feat = jnp.dot(a.astype(jnp.bfloat16), aw_ref[0],
                   preferred_element_type=jnp.float32) + ab_ref[0]
    v_ref[0] = jnp.maximum(feat, 0.0).astype(v_ref.dtype)      # affine + ReLU


def encoder_call(patches, conv_w, conv_b, aff_w, aff_b):
    n_slices, rows, cin4 = patches.shape
    feat_ch = conv_w.shape[1]
    hidden = aff_w.shape[-1]
    return pl.pallas_call(
        _encoder_kernel,
        out_shape=jax.ShapeDtypeStruct((n_slices, rows, hidden), jnp.float32),
        grid=(n_slices,),
        in_specs=[
            pl.BlockSpec((1, rows, cin4), lambda i: (i, 0, 0)),
            pl.BlockSpec((cin4, feat_ch), lambda i: (0, 0)),
            pl.BlockSpec((1, feat_ch), lambda i: (0, 0)),
            pl.BlockSpec((1, feat_ch, hidden), lambda i: (i, 0, 0)),
            pl.BlockSpec((1, 1, hidden), lambda i: (i, 0, 0)),
        ],
        out_specs=pl.BlockSpec((1, rows, hidden), lambda i: (i, 0, 0)),
        compiler_params=pltpu.CompilerParams(dimension_semantics=("parallel",)),
    )(patches, conv_w, conv_b.reshape(1, feat_ch), aff_w,
      aff_b.reshape(n_slices, 1, hidden))


# ----------------------------- decoder kernel ------------------------------

def _decoder_kernel(x_ref, vf_ref, wih_ref, whh_ref, bl_ref,
                    wq_ref, wk_ref, wv_ref, wo_ref,
                    bq_ref, bk_ref, bv_ref, bo_ref,
                    wmh_ref, wmc_ref, bm_ref,
                    o_ref, *, seq, bs, heads):
    f32 = jnp.float32
    H = whh_ref.shape[0]
    dh = H // heads

    # ---- LSTM: hoisted input projection for ALL timesteps (one MXU matmul) ----
    gx = jnp.dot(x_ref[...], wih_ref[...], preferred_element_type=f32) + bl_ref[...]

    whh = whh_ref[...]                                   # (H, 4H) bf16
    h = jnp.zeros((bs, H), f32)
    c = jnp.zeros((bs, H), f32)
    hs = []
    # fully unrolled recurrence (seq is static) so the LLO scheduler can
    # interleave the recurrent matmul with EUP sigmoid/tanh and VPU elementwise.
    for t in range(seq):
        gates = gx[t * bs:(t + 1) * bs, :] + jnp.dot(
            h.astype(jnp.bfloat16), whh, preferred_element_type=f32)   # (bs, 4H)
        i_g = jax.nn.sigmoid(gates[:, 0 * H:1 * H])       # PyTorch gate order i,f,g,o
        f_g = jax.nn.sigmoid(gates[:, 1 * H:2 * H])
        g_g = jnp.tanh(gates[:, 2 * H:3 * H])
        o_g = jax.nn.sigmoid(gates[:, 3 * H:4 * H])
        c = f_g * c + i_g * g_g
        h = o_g * jnp.tanh(c)
        hs.append(h)
    hid = jnp.stack(hs, axis=0)                           # (seq, bs, H) f32

    # ---- head-batched MHA + fused (concat-free) vocab projection ----
    scale = 1.0 / math.sqrt(dh)
    wq = wq_ref[...]; wk = wk_ref[...]; wv = wv_ref[...]; wo = wo_ref[...]
    wmh = wmh_ref[...]; wmc = wmc_ref[...]
    for b in range(bs):
        hb16 = hid[:, b, :].astype(jnp.bfloat16)          # (seq, H)
        vb16 = vf_ref[b]                                  # (Lk, H) bf16
        hq = jnp.broadcast_to(hb16[None], (heads,) + hb16.shape)   # (heads, seq, H)
        vk = jnp.broadcast_to(vb16[None], (heads,) + vb16.shape)   # (heads, Lk, H)
        q = jnp.einsum('nqe,ned->nqd', hq, wq, preferred_element_type=f32) + bq_ref[...]
        k = jnp.einsum('nke,ned->nkd', vk, wk, preferred_element_type=f32) + bk_ref[...]
        v = jnp.einsum('nke,ned->nkd', vk, wv, preferred_element_type=f32) + bv_ref[...]
        s = jnp.einsum('nqd,nkd->nqk', q, k, preferred_element_type=f32) * scale
        s = s - jnp.max(s, axis=-1, keepdims=True)
        p = jnp.exp(s)
        p = p * pl.reciprocal(jnp.sum(p, axis=-1, keepdims=True), approx=True)
        ctx = jnp.einsum('nqk,nkd->nqd', p, v, preferred_element_type=f32)  # (heads, seq, dh)
        # output projection: sum over heads == (concat heads) @ W_o
        ctx_o = jnp.sum(jnp.einsum('nqd,ndh->nqh', ctx.astype(jnp.bfloat16), wo,
                                   preferred_element_type=f32), axis=0) + bo_ref[...]
        # mlp([hiddens ; ctx]) without materializing the concat: split weights.
        logits = (jnp.dot(hb16, wmh, preferred_element_type=f32)
                  + jnp.dot(ctx_o.astype(jnp.bfloat16), wmc, preferred_element_type=f32)
                  + bm_ref[...])                          # (seq, Vpad) lane-dense
        o_ref[b] = logits.astype(o_ref.dtype)             # leading-dim, lane-dense store


def decoder_call(x2, vf16, p, *, heads, seq, bs):
    H = p["lstm_whh"].shape[0]
    vpad = p["mlp_wh"].shape[1]
    operands = (
        x2, vf16,
        p["lstm_wih"], p["lstm_whh"], p["lstm_b"].reshape(1, 4 * H),
        p["wq_h"], p["wk_h"], p["wv_h"], p["wo_h"],
        p["bq_h"], p["bk_h"], p["bv_h"], p["bo"].reshape(1, H),
        p["mlp_wh"], p["mlp_wc"], p["mlp_b"].reshape(1, vpad),
    )
    in_specs = [_full_spec(op.shape) for op in operands]
    return pl.pallas_call(
        partial(_decoder_kernel, seq=seq, bs=bs, heads=heads),
        out_shape=jax.ShapeDtypeStruct((bs, seq, vpad), jnp.float32),
        grid=(1,),
        in_specs=in_specs,
        out_specs=_full_spec((bs, seq, vpad)),
        compiler_params=pltpu.CompilerParams(dimension_semantics=("arbitrary",)),
    )(*operands)


# --------------------------- parameters / glue ------------------------------

def init_params(key, *, vocab_size, embed_size, hidden_size, N, c_in, feat_ch, heads):
    keys = iter(jax.random.split(key, 32))

    def kaiming_u(k, shape, fan_in):
        bound = math.sqrt(6.0 / fan_in)       # kaiming_uniform, fan_in mode
        return jax.random.uniform(k, shape, jnp.float32, -bound, bound)

    def kaiming_n(k, shape, fan_in):
        std = math.sqrt(2.0 / fan_in)         # kaiming_normal, fan_in mode
        return std * jax.random.normal(k, shape, jnp.float32)

    H = hidden_size
    dh = H // heads
    vpad = ((vocab_size + 127) // 128) * 128

    p = {}
    # stand-in conv (2x2 patches, stride 2) for the ResNet backbone
    p["conv_w"] = kaiming_u(next(keys), (c_in * 4, feat_ch), c_in * 4).astype(jnp.bfloat16)
    p["conv_b"] = jnp.zeros((feat_ch,), jnp.float32)
    # EncoderCNN: N+1 distinct Linear(feat_ch -> hidden)
    p["aff_w"] = jnp.stack([kaiming_u(next(keys), (feat_ch, H), feat_ch)
                            for _ in range(N + 1)]).astype(jnp.bfloat16)
    p["aff_b"] = jnp.zeros((N + 1, H), jnp.float32)
    # Decoder
    p["embed"] = jax.random.normal(next(keys), (vocab_size, embed_size), jnp.float32)
    p["lstm_wih"] = kaiming_u(next(keys), (2 * embed_size, 4 * H), 2 * embed_size).astype(jnp.bfloat16)
    p["lstm_whh"] = kaiming_u(next(keys), (H, 4 * H), H).astype(jnp.bfloat16)
    p["lstm_b"] = jnp.zeros((4 * H,), jnp.float32)        # b_ih + b_hh combined
    # MHA weights in head-major layout (free host-side reshapes)
    wq = kaiming_u(next(keys), (H, H), H)
    wk = kaiming_u(next(keys), (H, H), H)
    wv = kaiming_u(next(keys), (H, H), H)
    wo = kaiming_u(next(keys), (H, H), H)
    p["wq_h"] = wq.reshape(H, heads, dh).transpose(1, 0, 2).astype(jnp.bfloat16)
    p["wk_h"] = wk.reshape(H, heads, dh).transpose(1, 0, 2).astype(jnp.bfloat16)
    p["wv_h"] = wv.reshape(H, heads, dh).transpose(1, 0, 2).astype(jnp.bfloat16)
    p["wo_h"] = wo.reshape(heads, dh, H).astype(jnp.bfloat16)
    p["bq_h"] = jnp.zeros((heads, 1, dh), jnp.float32)
    p["bk_h"] = jnp.zeros((heads, 1, dh), jnp.float32)
    p["bv_h"] = jnp.zeros((heads, 1, dh), jnp.float32)
    p["bo"] = jnp.zeros((H,), jnp.float32)
    # mlp(2H -> vocab): split into hiddens/ctx halves, lane-pad vocab to 128
    mlp_w = kaiming_n(next(keys), (2 * H, vocab_size), 2 * H)
    p["mlp_wh"] = jnp.pad(mlp_w[:H], ((0, 0), (0, vpad - vocab_size))).astype(jnp.bfloat16)
    p["mlp_wc"] = jnp.pad(mlp_w[H:], ((0, 0), (0, vpad - vocab_size))).astype(jnp.bfloat16)
    p["mlp_b"] = jnp.zeros((vpad,), jnp.float32)
    return p


def encoder2decoder_forward(params, images, captions, lengths, *, heads):
    bs, n_slices, C, Himg, Wimg = images.shape
    hidden = params["aff_w"].shape[-1]
    embed = params["embed"].shape[1]
    vocab = params["embed"].shape[0]

    # ----------------------------- EncoderCNN ------------------------------
    # TODO(synk): pretrained ResNet-152 replaced by a Pallas patch-conv stand-in.
    ph, pw = Himg // 2, Wimg // 2                        # 7x7 grid -> 49 tokens/slice
    rows = bs * ph * pw
    patches = images.reshape(bs, n_slices, C, ph, 2, pw, 2)
    patches = patches.transpose(1, 0, 3, 5, 2, 4, 6).reshape(n_slices, rows, C * 4)
    patches = patches.astype(jnp.bfloat16)
    V = encoder_call(patches, params["conv_w"], params["conv_b"],
                     params["aff_w"], params["aff_b"])   # (N+1, bs*49, hidden) f32
    curr_vf = V[-1].reshape(bs, ph * pw, hidden)         # == V[:, -1] in (bs, 49, hidden)

    # ------------------------------- Decoder --------------------------------
    emb = jnp.take(params["embed"], captions, axis=0)    # (bs, seq, E)
    v_a = jnp.mean(curr_vf, axis=1, keepdims=True)       # (bs, 1, hidden)
    x = jnp.concatenate([emb, jnp.broadcast_to(v_a, emb.shape)], axis=2)   # (bs, seq, 2E)
    seq = captions.shape[1]
    x2 = jnp.transpose(x, (1, 0, 2)).reshape(seq * bs, 2 * embed).astype(jnp.bfloat16)
    # dropout layers are identity (eval mode)
    scores = decoder_call(x2, curr_vf.astype(jnp.bfloat16), params,
                          heads=heads, seq=seq, bs=bs)   # (bs, seq, Vpad) batch-first

    # -------- pack_padded_sequence (batch_first=True, sorted descending) ----
    lengths = [int(l) for l in lengths]
    max_len = max(lengths)
    idx, batch_sizes = [], []
    for t in range(max_len):
        nb = sum(1 for L in lengths if L > t)
        batch_sizes.append(nb)
        for b in range(nb):
            idx.append(b * seq + t)                       # batch-first flat row index
    flat = scores[:, :, :vocab].reshape(bs * seq, vocab)  # drop the lane padding
    packed_data = flat[jnp.array(idx, dtype=jnp.int32)]
    return packed_data, jnp.array(batch_sizes, dtype=jnp.int32)


# --------------------------------- main -------------------------------------

if __name__ == "__main__":
    bs, N = 2, 2                 # N+1 = 3 image slices
    C, Himg, Wimg = 3, 14, 14    # stand-in conv -> 7x7 = 49 tokens per slice
    embed_size = hidden_size = 32
    vocab_size = 40
    feat_ch = 64                 # stand-in for the ResNet 2048-channel features
    heads = 8
    seq = 8

    key = jax.random.PRNGKey(0)
    k_img, k_cap, k_par = jax.random.split(key, 3)
    images = jax.random.normal(k_img, (bs, N + 1, C, Himg, Wimg), jnp.float32)
    captions = jax.random.randint(k_cap, (bs, seq), 0, vocab_size)
    lengths = [8, 6]             # sorted descending, as pack_padded_sequence requires

    params = init_params(k_par, vocab_size=vocab_size, embed_size=embed_size,
                         hidden_size=hidden_size, N=N, c_in=C, feat_ch=feat_ch,
                         heads=heads)

    packed_data, batch_sizes = encoder2decoder_forward(
        params, images, captions, lengths, heads=heads)
    packed_data = jax.block_until_ready(packed_data)

    assert packed_data.shape == (sum(lengths), vocab_size), packed_data.shape
    assert int(batch_sizes.sum()) == sum(lengths)
    print("KERNEL_OK")
</pallas_src>

<mosaic_0001>
module attributes {stable_mosaic.version = 11 : i64} {
  func.func @_encoder_kernel(%arg0: i32, %arg1: memref<1x98x12xbf16, #tpu.memory_space<vmem>>, %arg2: memref<12x64xbf16, #tpu.memory_space<vmem>>, %arg3: memref<1x64xf32, #tpu.memory_space<vmem>>, %arg4: memref<1x64x32xbf16, #tpu.memory_space<vmem>>, %arg5: memref<1x1x32xf32, #tpu.memory_space<vmem>>, %arg6: memref<1x98x32xf32, #tpu.memory_space<vmem>>) attributes {dimension_semantics = [#tpu.dimension_semantics<parallel>], iteration_bounds = array<i64: 3>, scalar_prefetch = 0 : i64, scratch_operands = 0 : i64, tpu.core_type = #tpu.core_type<tc>, window_params = [{transform_indices = @transform_0, window_bounds = array<i64: 1, 98, 12>}, {pipeline_mode = #tpu.pipeline_mode<synchronous>, transform_indices = @transform_1, window_bounds = array<i64: 12, 64>}, {pipeline_mode = #tpu.pipeline_mode<synchronous>, transform_indices = @transform_2, window_bounds = array<i64: 1, 64>}, {transform_indices = @transform_3, window_bounds = array<i64: 1, 64, 32>}, {transform_indices = @transform_4, window_bounds = array<i64: 1, 1, 32>}, {transform_indices = @transform_5, window_bounds = array<i64: 1, 98, 32>}]} {
    %c0 = arith.constant 0 : index
    %c0_0 = arith.constant 0 : index
    %c0_1 = arith.constant 0 : index
    %0 = vector.load %arg1[%c0, %c0_0, %c0_1] : memref<1x98x12xbf16, #tpu.memory_space<vmem>>, vector<1x98x12xbf16>
    %1 = vector.shape_cast %0 : vector<1x98x12xbf16> to vector<98x12xbf16>
    %c0_2 = arith.constant 0 : index
    %c0_3 = arith.constant 0 : index
    %2 = vector.load %arg2[%c0_2, %c0_3] : memref<12x64xbf16, #tpu.memory_space<vmem>>, vector<12x64xbf16>
    %cst = arith.constant dense<0.000000e+00> : vector<98x64xf32>
    %3 = tpu.matmul %1, %2, %cst {dimension_numbers = #tpu.dot_dimension_numbers<[1], [0], [0], [1], [0, 0, 1, 1], [], []>} : vector<98x12xbf16>, vector<12x64xbf16>, vector<98x64xf32> -> vector<98x64xf32>
    %c0_4 = arith.constant 0 : index
    %c0_5 = arith.constant 0 : index
    %4 = vector.load %arg3[%c0_4, %c0_5] : memref<1x64xf32, #tpu.memory_space<vmem>>, vector<1x64xf32>
    %5 = vector.broadcast %4 : vector<1x64xf32> to vector<98x64xf32>
    %6 = arith.addf %3, %5 : vector<98x64xf32>
    %cst_6 = arith.constant 0.000000e+00 : f32
    %7 = vector.broadcast %cst_6 : f32 to vector<98x64xf32>
    %8 = arith.maximumf %6, %7 : vector<98x64xf32>
    %9 = arith.truncf %8 : vector<98x64xf32> to vector<98x64xbf16>
    %c0_7 = arith.constant 0 : index
    %c0_8 = arith.constant 0 : index
    %c0_9 = arith.constant 0 : index
    %10 = vector.load %arg4[%c0_7, %c0_8, %c0_9] : memref<1x64x32xbf16, #tpu.memory_space<vmem>>, vector<1x64x32xbf16>
    %11 = vector.shape_cast %10 : vector<1x64x32xbf16> to vector<64x32xbf16>
    %cst_10 = arith.constant dense<0.000000e+00> : vector<98x32xf32>
    %12 = tpu.matmul %9, %11, %cst_10 {dimension_numbers = #tpu.dot_dimension_numbers<[1], [0], [0], [1], [0, 0, 1, 1], [], []>} : vector<98x64xbf16>, vector<64x32xbf16>, vector<98x32xf32> -> vector<98x32xf32>
    %c0_11 = arith.constant 0 : index
    %c0_12 = arith.constant 0 : index
    %c0_13 = arith.constant 0 : index
    %13 = vector.load %arg5[%c0_11, %c0_12, %c0_13] : memref<1x1x32xf32, #tpu.memory_space<vmem>>, vector<1x1x32xf32>
    %14 = vector.shape_cast %13 : vector<1x1x32xf32> to vector<1x32xf32>
    %15 = vector.broadcast %14 : vector<1x32xf32> to vector<98x32xf32>
    %16 = arith.addf %12, %15 : vector<98x32xf32>
    %cst_14 = arith.constant 0.000000e+00 : f32
    %17 = vector.broadcast %cst_14 : f32 to vector<98x32xf32>
    %18 = arith.maximumf %16, %17 : vector<98x32xf32>
    %c0_15 = arith.constant 0 : index
    %c0_16 = arith.constant 0 : index
    %c0_17 = arith.constant 0 : index
    %19 = vector.load %arg6[%c0_15, %c0_16, %c0_17] : memref<1x98x32xf32, #tpu.memory_space<vmem>>, vector<1x98x32xf32>
    %20 = vector.shape_cast %19 : vector<1x98x32xf32> to vector<98x32xf32>
    %21 = vector.shape_cast %18 : vector<98x32xf32> to vector<1x98x32xf32>
    tpu.vector_store %arg6[%c0_15, %c0_16, %c0_17], %21 {strides = array<i32>} : memref<1x98x32xf32, #tpu.memory_space<vmem>>, vector<1x98x32xf32>,
    return
  }
  func.func @transform_0(%arg0: i32) -> (i32, i32, i32) {
    %c0_i32 = arith.constant 0 : i32
    %c0_i32_0 = arith.constant 0 : i32
    %c0_i32_1 = arith.constant 0 : i32
    return %arg0, %c0_i32, %c0_i32_0 : i32, i32, i32
  }
  func.func @transform_1(%arg0: i32) -> (i32, i32) {
    %c0_i32 = arith.constant 0 : i32
    %c0_i32_0 = arith.constant 0 : i32
    %c0_i32_1 = arith.constant 0 : i32
    return %c0_i32, %c0_i32_0 : i32, i32
  }
  func.func @transform_2(%arg0: i32) -> (i32, i32) {
    %c0_i32 = arith.constant 0 : i32
    %c0_i32_0 = arith.constant 0 : i32
    %c0_i32_1 = arith.constant 0 : i32
    return %c0_i32, %c0_i32_0 : i32, i32
  }
  func.func @transform_3(%arg0: i32) -> (i32, i32, i32) {
    %c0_i32 = arith.constant 0 : i32
    %c0_i32_0 = arith.constant 0 : i32
    %c0_i32_1 = arith.constant 0 : i32
    return %arg0, %c0_i32, %c0_i32_0 : i32, i32, i32
  }
  func.func @transform_4(%arg0: i32) -> (i32, i32, i32) {
    %c0_i32 = arith.constant 0 : i32
    %c0_i32_0 = arith.constant 0 : i32
    %c0_i32_1 = arith.constant 0 : i32
    return %arg0, %c0_i32, %c0_i32_0 : i32, i32, i32
  }
  func.func @transform_5(%arg0: i32) -> (i32, i32, i32) {
    %c0_i32 = arith.constant 0 : i32
    %c0_i32_0 = arith.constant 0 : i32
    %c0_i32_1 = arith.constant 0 : i32
    return %arg0, %c0_i32, %c0_i32_0 : i32, i32, i32
  }
}

</mosaic_0001>

<bundles_post_ra>
// kernel: tpu_custom_call.1
= control target key start
LH: loop header
LB: loop body
LE: loop exit
PB: predicated region body
PF: predicated region fallthrough
CT: control target
= control target key end

     0   :  { %s747_s18 = smov 0   ;;  %s831_s0 = inlined_call_operand.vmem [shape: bf16[3,98,12], index: 0, kind: input, shape index: {}]   ;;  %s832_s1 = inlined_call_operand.vmem [shape: bf16[12,64], index: 1, kind: input, shape index: {}]   ;;  %s833_s2 = inlined_call_operand.vmem [shape: f32[1,64], index: 2, kind: input, shape index: {}]   ;;  %s834_s3 = inlined_call_operand.vmem [shape: bf16[3,64,32], index: 3, kind: input, shape index: {}]   ;;  %s835_s4 = inlined_call_operand.vmem [shape: f32[3,1,32], index: 4, kind: input, shape index: {}]   ;;  %s836_s5 = inlined_call_operand.vmem [shape: f32[3,98,32], index: 5, kind: output, shape index: {}]  }
   0x1 LB: > { %s611_s19 = sadd.s32 4294967295, %s715_s18   ;;  %p615_p0 = scmp.ge.s32.totalorder %s715_s18, 1  ;;  %s715_s18 = sphi %s747_s18, %s15_s18  }
   0x2   : > { %p205_p1 = scmp.lt.s32.totalorder %s715_s18, 4 }
   0x4   : > { %p206_p2 = pnand %p615_p0, %p205_p1 }
   0x5   : > { %p241_p3 = scmp.lt.s32.totalorder (!%p206_p2), %s611_s19, 2 }
   0x6   : > { %209 = sbr.rel (%p206_p2) target bundleno = 345 (0x159), region = 40 }
   0xb   : > { %v646_v0 = vld [vmem:[%s832_s1] sm:$0xf]  ;;  %v687_v1 = vld [vmem:[%s832_s1] sm:$0x30]  ;;  %vm339_vm0 = vcmask 1045504   ;;  %s838_s19 = smov (!%p241_p3, %s611_s19), 2 }
   0xc   : > { %v647_v2 = vor.u32 %v687_v1, %v646_v0  ;;  %s697_s24 = smul.u32 52, %s838_s19  ;;  %s253_s27 = scalar_lea.vmem %s835_s4, %s838_s19  ;;  %vm317_vm1 = vcmask 97280   ;;  %v708_v18 = vld [vmem:[%s833_s2] ss:$0 sm:$0xff]  ;;  %vm442_vm2 = vcmask 523264   ;;  %vm520_vm3 = vcmask 261120  }
   0xd   : > { %s680_s6 = sshll.u32 %s838_s19, 5  ;;  %v707_v1 = vld [vmem:[%s253_s27] ss:$0 sm:$0xff]  ;;  %s698_s14 = smul.u32 104, %s838_s19  ;;  %vm533_vm4 = vcmask 254976  }
   0xe   : > { %v341_v3 = vsel %vm339_vm0, %v647_v2, 0  ;;  %s245_s30 = scalar_lea.vmem %s831_s0, %s697_s24  ;;  %s250_s9 = scalar_lea.vmem %s834_s3, %s680_s6 }
   0xf   : > { %350 = vmatpush.bf16.msra.mxu0 %v341_v3  ;;  %692 = vmatpush.bf16.msra.mxu3 %v341_v3  ;;  %v681_v4 = vld [vmem:[%s245_s30] sm:$0xff]  ;;  %v682_v6 = vld [vmem:[%s245_s30 + $0x8] sm:$0xff]  ;;  %v272_v8 = vld [vmem:[%s245_s30 + $0x30] sm:$0x1]  ;;  %s801_s17 = scalar_lea.vmem %s836_s5, %s698_s14 }
  0x10   : > { %v685_v5 = vld [vmem:[%s245_s30 + $0x20] sm:$0xff]  ;;  %v686_v7 = vld [vmem:[%s245_s30 + $0x28] sm:$0xff]  ;;  %v304_v9 = vunpack.c.l.b16 %v272_v8  ;;  %v683_v10 = vld [vmem:[%s245_s30 + $0x10] sm:$0xff] }
  0x11   : > { %v684_v12 = vld [vmem:[%s245_s30 + $0x18] sm:$0xff]  ;;  %v690_v14 = vld [vmem:[%s250_s9 + $0x10] sm:$0xff]  ;;  %v689_v15 = vld [vmem:[%s250_s9 + $0x8] sm:$0xff] }
  0x12   : > { %648 = vmatmul.msk.bf16.vlgmr.msra.gmra.mxu0 %vm317_vm1, %v681_v4  ;;  %652 = vmatmul.msk.bf16.vlgmr.msra.gmra.mxu3 %vm317_vm1, %v685_v5  ;;  %v311_v11 = vpack.c.b16 %v304_v9, %v304_v9  ;;  %v691_v13 = vld [vmem:[%s250_s9 + $0x18] sm:$0xff]  ;;  %v688_v16 = vld [vmem:[%s250_s9] sm:$0xff] }
  0x13   : > { %468 = vmatpush.bf16.msra.mxu1 %v691_v13  ;;  %693 = vmatpush.bf16.msra.mxu2 %v691_v13 }
  0x17   : > { %469 = vmatpush.bf16.msra.mxu1 %v690_v14  ;;  %694 = vmatpush.bf16.msra.mxu2 %v690_v14 }
  0x1b   : > { %470 = vmatpush.bf16.msra.mxu1 %v689_v15  ;;  %695 = vmatpush.bf16.msra.mxu2 %v689_v15 }
  0x1f   : > { %471 = vmatpush.bf16.msra.mxu1 %v688_v16  ;;  %696 = vmatpush.bf16.msra.mxu2 %v688_v16 }
  0x22   : > { %649 = vmatmul.msk.bf16.gmra.mxu0 %vm317_vm1, %v682_v6  ;;  %653 = vmatmul.msk.bf16.gmra.mxu3 %vm317_vm1, %v686_v7 }
  0x32   : > { %650 = vmatmul.msk.bf16.gmra.mxu0 %vm317_vm1, %v683_v10  ;;  %654 = vmatmul.msk.bf16.gmra.mxu3 %vm317_vm1, %v311_v11 }
  0x42   : > { %651 = vmatmul.msk.bf16.gmra.mxu0 %vm317_vm1, %v684_v12 }
  0x8f   : > { %v352_v17 = vpop.f32.mrf.mxu0 }
  0x90   : > { %v353_v20 = vadd.f32 %v708_v18, %v352_v17 }
  0x92   : > { %v386_v23 = vmax.f32 %v353_v20, 0.0 }
  0x95   : > { %v372_v19 = vpop.f32.mrf.mxu3 }
  0x96   : > { %v373_v24 = vadd.f32 %v708_v18, %v372_v19 }
  0x97   : > { %v354_v21 = vpop.f32.mrf.mxu0 }
  0x98   : > { %v355_v22 = vadd.f32 %v708_v18, %v354_v21  ;;  %v394_v28 = vmax.f32 %v373_v24, 0.0 }
  0x9a   : > { %v387_v25 = vmax.f32 %v355_v22, 0.0 }
  0x9c   : > { %v399_v26 = vpack.c.bf16 %v387_v25, %v386_v23 }
  0x9d   : > { %v374_v27 = vpop.f32.mrf.mxu3 }
  0x9e   : > { %v375_v29 = vadd.f32 %v708_v18, %v374_v27  ;;  %671 = vmatmul.msk.bf16.vlgmr.msra.gmra.mxu1 %vm442_vm2, %v399_v26 }
  0x9f   : > { %v357_v30 = vpop.f32.mrf.mxu0 }
  0xa0   : > { %v395_v31 = vmax.f32 %v375_v29, 0.0  ;;  %v358_v34 = vadd.f32 %v708_v18, %v357_v30 }
  0xa2   : > { %v403_v32 = vpack.c.bf16 %v395_v31, %v394_v28  ;;  %v388_v37 = vmax.f32 %v358_v34, 0.0 }
  0xa4   : > { %675 = vmatmul.msk.bf16.vlgmr.msra.gmra.mxu2 %vm442_vm2, %v403_v32 }
  0xa5   : > { %v377_v33 = vpop.f32.mrf.mxu3 }
  0xa6   : > { %v378_v38 = vadd.f32 %v708_v18, %v377_v33 }
  0xa7   : > { %v359_v35 = vpop.f32.mrf.mxu0 }
  0xa8   : > { %v360_v36 = vadd.f32 %v708_v18, %v359_v35  ;;  %v396_v42 = vmax.f32 %v378_v38, 0.0 }
  0xaa   : > { %v389_v39 = vmax.f32 %v360_v36, 0.0 }
  0xac   : > { %v400_v40 = vpack.c.bf16 %v389_v39, %v388_v37 }
  0xad   : > { %v379_v41 = vpop.f32.mrf.mxu3 }
  0xae   : > { %v380_v43 = vadd.f32 %v708_v18, %v379_v41  ;;  %672 = vmatmul.msk.bf16.gmra.mxu1 %vm442_vm2, %v400_v40 }
  0xaf   : > { %v362_v44 = vpop.f32.mrf.mxu0 }
  0xb0   : > { %v397_v45 = vmax.f32 %v380_v43, 0.0  ;;  %v363_v48 = vadd.f32 %v708_v18, %v362_v44 }
  0xb2   : > { %v404_v46 = vpack.c.bf16 %v397_v45, %v396_v42  ;;  %v390_v52 = vmax.f32 %v363_v48, 0.0 }
  0xb4   : > { %676 = vmatmul.msk.bf16.gmra.mxu2 %vm442_vm2, %v404_v46 }
  0xb5   : > { %v382_v47 = vpop.f32.mrf.mxu3 }
  0xb6   : > { %v383_v51 = vadd.f32 %v708_v18, %v382_v47 }
  0xb7   : > { %v364_v49 = vpop.f32.mrf.mxu0 }
  0xb8   : > { %v365_v50 = vadd.f32 %v708_v18, %v364_v49  ;;  %v398_v55 = vmax.f32 %v383_v51, 0.0 }
  0xba   : > { %v391_v53 = vmax.f32 %v365_v50, 0.0  ;;  %v405_v58 = vpack.c.bf16 %v398_v55, %v398_v55 }
  0xbc   : > { %v401_v54 = vpack.c.bf16 %v391_v53, %v390_v52 }
  0xbd   : > { %v384_v56 = vpop.f32.mrf.mxu3 }
  0xbe   : > { %673 = vmatmul.msk.bf16.gmra.mxu1 %vm442_vm2, %v401_v54 }
  0xbf   : > { %v367_v57 = vpop.f32.mrf.mxu0 }
  0xc0   : > { %v368_v59 = vadd.f32 %v708_v18, %v367_v57 }
  0xc2   : > { %v392_v62 = vmax.f32 %v368_v59, 0.0 }
  0xc4   : > { %677 = vmatmul.msk.bf16.gmra.mxu2 %vm442_vm2, %v405_v58 }
  0xc7   : > { %v369_v60 = vpop.f32.mrf.mxu0 }
  0xc8   : > { %v370_v61 = vadd.f32 %v708_v18, %v369_v60 }
  0xca   : > { %v393_v63 = vmax.f32 %v370_v61, 0.0 }
  0xcc   : > { %v402_v0 = vpack.c.bf16 %v393_v63, %v392_v62 }
  0xce   : > { %674 = vmatmul.msk.bf16.gmra.mxu1 %vm442_vm2, %v402_v0 }
 0x11b   : > { %v473_v2 = vpop.f32.mrf.mxu1 }
 0x11c   : > { %v474_v3 = vadd.f32 %v707_v1, %v473_v2 }
 0x11e   : > { %v507_v4 = vmax.f32 %v474_v3, 0.0 }
 0x120   : > { %521 = vst.msk [vmem:[%s801_s17] sm:$0xff] %vm520_vm3, %v507_v4 }
 0x123   : > { %v475_v5 = vpop.f32.mrf.mxu1 }
 0x124   : > { %v476_v6 = vadd.f32 %v707_v1, %v475_v5 }
 0x126   : > { %v508_v7 = vmax.f32 %v476_v6, 0.0 }
 0x127   : > { %v493_v8 = vpop.f32.mrf.mxu2 }
 0x128   : > { %522 = vst.msk [vmem:[%s801_s17 + $0x8] sm:$0xff] %vm520_vm3, %v508_v7  ;;  %v494_v9 = vadd.f32 %v707_v1, %v493_v8 }
 0x12a   : > { %v515_v10 = vmax.f32 %v494_v9, 0.0 }
 0x12b   : > { %v478_v11 = vpop.f32.mrf.mxu1 }
 0x12c   : > { %529 = vst.msk [vmem:[%s801_s17 + $0x40] sm:$0xff] %vm520_vm3, %v515_v10  ;;  %v479_v12 = vadd.f32 %v707_v1, %v478_v11 }
 0x12e   : > { %v509_v13 = vmax.f32 %v479_v12, 0.0 }
 0x12f   : > { %v495_v14 = vpop.f32.mrf.mxu2 }
 0x130   : > { %523 = vst.msk [vmem:[%s801_s17 + $0x10] sm:$0xff] %vm520_vm3, %v509_v13  ;;  %v496_v15 = vadd.f32 %v707_v1, %v495_v14 }
 0x132   : > { %v516_v16 = vmax.f32 %v496_v15, 0.0 }
 0x133   : > { %v480_v17 = vpop.f32.mrf.mxu1 }
 0x134   : > { %530 = vst.msk [vmem:[%s801_s17 + $0x48] sm:$0xff] %vm520_vm3, %v516_v16  ;;  %v481_v18 = vadd.f32 %v707_v1, %v480_v17 }
 0x136   : > { %v510_v19 = vmax.f32 %v481_v18, 0.0 }
 0x137   : > { %v498_v20 = vpop.f32.mrf.mxu2 }
 0x138   : > { %524 = vst.msk [vmem:[%s801_s17 + $0x18] sm:$0xff] %vm520_vm3, %v510_v19  ;;  %v499_v21 = vadd.f32 %v707_v1, %v498_v20 }
 0x13a   : > { %v517_v22 = vmax.f32 %v499_v21, 0.0 }
 0x13b   : > { %v483_v23 = vpop.f32.mrf.mxu1 }
 0x13c   : > { %531 = vst.msk [vmem:[%s801_s17 + $0x50] sm:$0xff] %vm520_vm3, %v517_v22  ;;  %v484_v24 = vadd.f32 %v707_v1, %v483_v23 }
 0x13e   : > { %v511_v25 = vmax.f32 %v484_v24, 0.0 }
 0x13f   : > { %v500_v26 = vpop.f32.mrf.mxu2 }
 0x140   : > { %525 = vst.msk [vmem:[%s801_s17 + $0x20] sm:$0xff] %vm520_vm3, %v511_v25  ;;  %v501_v27 = vadd.f32 %v707_v1, %v500_v26 }
 0x142   : > { %v518_v28 = vmax.f32 %v501_v27, 0.0 }
 0x143   : > { %v485_v29 = vpop.f32.mrf.mxu1 }
 0x144   : > { %532 = vst.msk [vmem:[%s801_s17 + $0x58] sm:$0xff] %vm520_vm3, %v518_v28  ;;  %v486_v30 = vadd.f32 %v707_v1, %v485_v29 }
 0x146   : > { %v512_v31 = vmax.f32 %v486_v30, 0.0 }
 0x147   : > { %v503_v32 = vpop.f32.mrf.mxu2 }
 0x148   : > { %526 = vst.msk [vmem:[%s801_s17 + $0x28] sm:$0xff] %vm520_vm3, %v512_v31  ;;  %v504_v33 = vadd.f32 %v707_v1, %v503_v32 }
 0x14a   : > { %v519_v34 = vmax.f32 %v504_v33, 0.0 }
 0x14b   : > { %v488_v35 = vpop.f32.mrf.mxu1 }
 0x14c   : > { %534 = vst.msk [vmem:[%s801_s17 + $0x60] sm:$0x3] %vm533_vm4, %v519_v34  ;;  %v489_v36 = vadd.f32 %v707_v1, %v488_v35 }
 0x14e   : > { %v513_v37 = vmax.f32 %v489_v36, 0.0 }
 0x14f   : > { %v505_v38 = vpop.f32.mrf.mxu2 }
 0x150   : > { %527 = vst.msk [vmem:[%s801_s17 + $0x30] sm:$0xff] %vm520_vm3, %v513_v37 }
 0x153   : > { %v490_v39 = vpop.f32.mrf.mxu1 }
 0x154   : > { %v491_v40 = vadd.f32 %v707_v1, %v490_v39 }
 0x156   : > { %v514_v41 = vmax.f32 %v491_v40, 0.0 }
 0x158   : > { %528 = vst.msk [vmem:[%s801_s17 + $0x38] sm:$0xff] %vm520_vm3, %v514_v41 }
 0x159 PF: > { %s15_s18 = sadd.s32 1, %s715_s18  }
 0x15a   : > { %p12_p4 = scmp.ge.s32.totalorder %s15_s18, 5  }
 0x15c   :  { %14 = sbr.rel (!%p12_p4) target bundleno = 1 (0x1), region = 76 }

</bundles_post_ra>
